<compile_context>
chip_gen: v7x
topology: tpu7x:2x2x1
jax: 0.10.0
libtpu: 0.0.40
codegen_flags: <defaults>
</compile_context>

<pallas_src>
import math

import jax
import jax.numpy as jnp
import numpy as np
from jax.experimental import pallas as pl
from jax.experimental.pallas import tpu as pltpu


def _timestep_embedder_kernel(t_ref, freqs_ref, w1_ref, b1_ref, w2_ref, b2_ref,
                              out_ref):
    half = freqs_ref.shape[1]

    # Sinusoidal embedding (cheap; recomputed per column tile so the grid axis is
    # fully parallel -> megacore sharding on v7x).
    args = t_ref[...] * freqs_ref[...]                        # (N_pad, half) f32
    cos_e = jnp.cos(args).astype(jnp.bfloat16)
    sin_e = jnp.sin(args).astype(jnp.bfloat16)

    # Linear1 without a lane-axis concatenate:
    #   [cos, sin] @ W1 == cos @ W1[:half] + sin @ W1[half:]
    h = (jnp.dot(cos_e, w1_ref[:half, :], preferred_element_type=jnp.float32)
         + jnp.dot(sin_e, w1_ref[half:, :], preferred_element_type=jnp.float32)
         + b1_ref[...])
    h = (h * jax.nn.sigmoid(h)).astype(jnp.bfloat16)          # SiLU, bf16 for MXU

    # Linear2 column tile: bf16 x bf16 -> f32 accumulate (no weight upcast).
    out = jnp.dot(h, w2_ref[...], preferred_element_type=jnp.float32) + b2_ref[...]
    out_ref[...] = out.astype(out_ref.dtype)


def _round_up(x, m):
    return ((x + m - 1) // m) * m


def _footprint_bytes(h_pad, tn, n_pad, f):
    """Estimated VMEM footprint (double-buffered BlockSpec inputs/outputs)."""
    half = f // 2
    per_step = 2 * (h_pad * tn * 2          # W2 column tile (bf16)
                    + tn * 4                # b2 tile (f32)
                    + n_pad * tn * 4)       # out tile (f32)
    resident = 2 * (n_pad * 4               # t
                    + half * 4              # freqs
                    + f * h_pad * 2         # W1 (bf16)
                    + h_pad * 4)            # b1
    return per_step + resident


def _pick_tn(h_pad, n_pad, f, budget_bytes=28 << 20):
    """Largest 128-multiple divisor of h_pad whose footprint fits the VMEM budget."""
    best = 128
    for tn in range(128, h_pad + 1, 128):
        if h_pad % tn == 0 and _footprint_bytes(h_pad, tn, n_pad, f) <= budget_bytes:
            best = tn
    return best


def prepare_timestep_embedder_params(w1, b1, w2, b2, *, frequency_embedding_size=256,
                                     max_period=10000):
    """One-time (init-time) weight prep: zero-pad H to a 128 multiple, cast to bf16.

    w1: (F, H) pre-transposed Linear1 weight (i.e. torch weight .T); b1: (H,)
    w2: (H, H) pre-transposed Linear2 weight; b2: (H,)
    """
    # TODO(synk): odd frequency_embedding_size zero-pad branch not implemented
    # (module default 256 is even).
    assert frequency_embedding_size % 2 == 0
    F, H = w1.shape
    assert F == frequency_embedding_size
    half = F // 2
    H_pad = _round_up(H, 128)

    w1_p = jnp.zeros((F, H_pad), jnp.bfloat16).at[:, :H].set(w1.astype(jnp.bfloat16))
    b1_p = jnp.zeros((1, H_pad), jnp.float32).at[0, :H].set(b1.astype(jnp.float32))
    w2_p = jnp.zeros((H_pad, H_pad), jnp.bfloat16).at[:H, :H].set(w2.astype(jnp.bfloat16))
    b2_p = jnp.zeros((1, H_pad), jnp.float32).at[0, :H].set(b2.astype(jnp.float32))

    freqs = jnp.asarray(
        np.exp(-math.log(float(max_period)) *
               np.arange(half, dtype=np.float32) / float(half)).reshape(1, half))

    return dict(freqs=freqs, w1=w1_p, b1=b1_p, w2=w2_p, b2=b2_p, F=F, H=H)


def timestep_embedder_apply(t, params):
    """t: () or (N,) timesteps; params from prepare_timestep_embedder_params.
    Returns (N, H) float32."""
    t = jnp.asarray(t)
    if t.ndim == 0:
        t = t[None]
    N = t.shape[0]
    F, H = params["F"], params["H"]
    half = F // 2
    H_pad = params["w1"].shape[1]

    N_pad = _round_up(max(N, 1), 8)
    TN = _pick_tn(H_pad, N_pad, F)
    num_steps = H_pad // TN

    # Per-call prep is only the tiny timestep vector (zero-padded rows are sliced off).
    t_p = jnp.zeros((N_pad, 1), jnp.float32).at[:N, 0].set(t.astype(jnp.float32))

    vmem_bytes = _footprint_bytes(H_pad, TN, N_pad, F)
    vmem_limit = int(max(vmem_bytes + (4 << 20), 16 << 20))   # never below the need

    cost = pl.CostEstimate(
        flops=int(2 * N_pad * F * H_pad * num_steps + 2 * N_pad * H_pad * H_pad),
        transcendentals=int(N_pad * (F + H_pad) * num_steps),
        bytes_accessed=int(N_pad * 4 + half * 4 + F * H_pad * 2 + H_pad * 4
                           + H_pad * H_pad * 2 + H_pad * 4 + N_pad * H_pad * 4),
    )

    out = pl.pallas_call(
        _timestep_embedder_kernel,
        out_shape=jax.ShapeDtypeStruct((N_pad, H_pad), jnp.float32),
        grid=(num_steps,),
        in_specs=[
            pl.BlockSpec((N_pad, 1), lambda j: (0, 0)),      # t (resident)
            pl.BlockSpec((1, half), lambda j: (0, 0)),       # freqs (resident)
            pl.BlockSpec((F, H_pad), lambda j: (0, 0)),      # W1 (resident, bf16)
            pl.BlockSpec((1, H_pad), lambda j: (0, 0)),      # b1 (resident)
            pl.BlockSpec((H_pad, TN), lambda j: (0, j)),     # W2 column tile (bf16)
            pl.BlockSpec((1, TN), lambda j: (0, j)),         # b2 tile
        ],
        out_specs=pl.BlockSpec((N_pad, TN), lambda j: (0, j)),
        compiler_params=pltpu.CompilerParams(
            dimension_semantics=("parallel",),               # no cross-step dependence
            vmem_limit_bytes=vmem_limit),
        cost_estimate=cost,
    )(t_p, params["freqs"], params["w1"], params["b1"], params["w2"], params["b2"])

    return out[:N, :H]


def timestep_embedder(t, w1, b1, w2, b2, *, frequency_embedding_size=256,
                      max_period=10000):
    """Convenience one-shot wrapper (prep + apply). Prefer preparing params once."""
    params = prepare_timestep_embedder_params(
        w1, b1, w2, b2, frequency_embedding_size=frequency_embedding_size,
        max_period=max_period)
    return timestep_embedder_apply(t, params)


def _reference(t, w1, b1, w2, b2, freq_size=256, max_period=10000):
    half = freq_size // 2
    freqs = np.exp(-math.log(max_period) * np.arange(half, dtype=np.float32) / half)
    args = np.asarray(t, np.float32)[:, None] * freqs[None]
    emb = np.concatenate([np.cos(args), np.sin(args)], axis=-1)
    h = emb @ np.asarray(w1, np.float32) + np.asarray(b1, np.float32)[None]
    h = h * (1.0 / (1.0 + np.exp(-h)))
    return h @ np.asarray(w2, np.float32) + np.asarray(b2, np.float32)[None]


if __name__ == "__main__":
    N = 8                      # batch of timesteps
    F = 256                    # frequency_embedding_size (module default)
    H = 32                     # hidden_size (small synthetic; padded to 128 internally)

    key = jax.random.PRNGKey(0)
    k_t, k_w1, k_b1, k_w2, k_b2 = jax.random.split(key, 5)

    t = jax.random.uniform(k_t, (N,), jnp.float32) * 1000.0   # fractional timesteps
    # nn.Linear weights stored pre-transposed as (in_features, out_features).
    w1 = jax.random.normal(k_w1, (F, H), jnp.float32) * 0.02
    b1 = jax.random.normal(k_b1, (H,), jnp.float32) * 0.02
    w2 = jax.random.normal(k_w2, (H, H), jnp.float32) * 0.02
    b2 = jax.random.normal(k_b2, (H,), jnp.float32) * 0.02

    # Init-time weight prep (padding + bf16 cast happens once, not per call).
    params = prepare_timestep_embedder_params(w1, b1, w2, b2,
                                              frequency_embedding_size=F)
    out = jax.block_until_ready(timestep_embedder_apply(t, params))

    # Weights + activations are bf16 on the MXU (f32 accumulate); compare against the
    # f32 reference with a tolerance covering bf16 quantization.
    ref = _reference(np.asarray(t), w1, b1, w2, b2, freq_size=F)
    np.testing.assert_allclose(np.asarray(out), ref, rtol=3e-2, atol=3e-3)

    print("KERNEL_OK")
</pallas_src>

<mosaic_0001>
module attributes {stable_mosaic.version = 11 : i64} {
  func.func @_timestep_embedder_kernel(%arg0: i32, %arg1: memref<8x1xf32, #tpu.memory_space<vmem>>, %arg2: memref<1x128xf32, #tpu.memory_space<vmem>>, %arg3: memref<256x128xbf16, #tpu.memory_space<vmem>>, %arg4: memref<1x128xf32, #tpu.memory_space<vmem>>, %arg5: memref<128x128xbf16, #tpu.memory_space<vmem>>, %arg6: memref<1x128xf32, #tpu.memory_space<vmem>>, %arg7: memref<8x128xf32, #tpu.memory_space<vmem>>) attributes {dimension_semantics = [#tpu.dimension_semantics<parallel>], iteration_bounds = array<i64: 1>, scalar_prefetch = 0 : i64, scratch_operands = 0 : i64, tpu.core_type = #tpu.core_type<tc>, window_params = [{pipeline_mode = #tpu.pipeline_mode<synchronous>, transform_indices = @transform_0, window_bounds = array<i64: 8, 1>}, {pipeline_mode = #tpu.pipeline_mode<synchronous>, transform_indices = @transform_1, window_bounds = array<i64: 1, 128>}, {pipeline_mode = #tpu.pipeline_mode<synchronous>, transform_indices = @transform_2, window_bounds = array<i64: 256, 128>}, {pipeline_mode = #tpu.pipeline_mode<synchronous>, transform_indices = @transform_3, window_bounds = array<i64: 1, 128>}, {transform_indices = @transform_4, window_bounds = array<i64: 128, 128>}, {transform_indices = @transform_5, window_bounds = array<i64: 1, 128>}, {transform_indices = @transform_6, window_bounds = array<i64: 8, 128>}]} {
    %c0 = arith.constant 0 : index
    %c0_0 = arith.constant 0 : index
    %0 = vector.load %arg1[%c0, %c0_0] : memref<8x1xf32, #tpu.memory_space<vmem>>, vector<8x1xf32>
    %c0_1 = arith.constant 0 : index
    %c0_2 = arith.constant 0 : index
    %1 = vector.load %arg2[%c0_1, %c0_2] : memref<1x128xf32, #tpu.memory_space<vmem>>, vector<1x128xf32>
    %2 = vector.broadcast %0 : vector<8x1xf32> to vector<8x128xf32>
    %3 = vector.broadcast %1 : vector<1x128xf32> to vector<8x128xf32>
    %4 = arith.mulf %2, %3 : vector<8x128xf32>
    %5 = math.cos %4 : vector<8x128xf32>
    %6 = arith.truncf %5 : vector<8x128xf32> to vector<8x128xbf16>
    %7 = math.sin %4 : vector<8x128xf32>
    %8 = arith.truncf %7 : vector<8x128xf32> to vector<8x128xbf16>
    %c0_3 = arith.constant 0 : index
    %c0_4 = arith.constant 0 : index
    %9 = vector.load %arg3[%c0_3, %c0_4] : memref<256x128xbf16, #tpu.memory_space<vmem>>, vector<128x128xbf16>
    %cst = arith.constant dense<0.000000e+00> : vector<8x128xf32>
    %10 = tpu.matmul %6, %9, %cst {dimension_numbers = #tpu.dot_dimension_numbers<[1], [0], [0], [1], [0, 0, 1, 1], [], []>} : vector<8x128xbf16>, vector<128x128xbf16>, vector<8x128xf32> -> vector<8x128xf32>
    %c128 = arith.constant 128 : index
    %c0_5 = arith.constant 0 : index
    %11 = vector.load %arg3[%c128, %c0_5] : memref<256x128xbf16, #tpu.memory_space<vmem>>, vector<128x128xbf16>
    %cst_6 = arith.constant dense<0.000000e+00> : vector<8x128xf32>
    %12 = tpu.matmul %8, %11, %cst_6 {dimension_numbers = #tpu.dot_dimension_numbers<[1], [0], [0], [1], [0, 0, 1, 1], [], []>} : vector<8x128xbf16>, vector<128x128xbf16>, vector<8x128xf32> -> vector<8x128xf32>
    %13 = arith.addf %10, %12 : vector<8x128xf32>
    %c0_7 = arith.constant 0 : index
    %c0_8 = arith.constant 0 : index
    %14 = vector.load %arg4[%c0_7, %c0_8] : memref<1x128xf32, #tpu.memory_space<vmem>>, vector<1x128xf32>
    %15 = vector.broadcast %14 : vector<1x128xf32> to vector<8x128xf32>
    %16 = arith.addf %13, %15 : vector<8x128xf32>
    %17 = arith.negf %16 : vector<8x128xf32>
    %18 = math.exp %17 : vector<8x128xf32>
    %cst_9 = arith.constant 1.000000e+00 : f32
    %19 = vector.broadcast %cst_9 : f32 to vector<8x128xf32>
    %20 = arith.addf %19, %18 : vector<8x128xf32>
    %21 = arith.divf %19, %20 : vector<8x128xf32>
    %22 = arith.mulf %16, %21 : vector<8x128xf32>
    %23 = arith.truncf %22 : vector<8x128xf32> to vector<8x128xbf16>
    %c0_10 = arith.constant 0 : index
    %c0_11 = arith.constant 0 : index
    %24 = vector.load %arg5[%c0_10, %c0_11] : memref<128x128xbf16, #tpu.memory_space<vmem>>, vector<128x128xbf16>
    %cst_12 = arith.constant dense<0.000000e+00> : vector<8x128xf32>
    %25 = tpu.matmul %23, %24, %cst_12 {dimension_numbers = #tpu.dot_dimension_numbers<[1], [0], [0], [1], [0, 0, 1, 1], [], []>} : vector<8x128xbf16>, vector<128x128xbf16>, vector<8x128xf32> -> vector<8x128xf32>
    %c0_13 = arith.constant 0 : index
    %c0_14 = arith.constant 0 : index
    %26 = vector.load %arg6[%c0_13, %c0_14] : memref<1x128xf32, #tpu.memory_space<vmem>>, vector<1x128xf32>
    %27 = vector.broadcast %26 : vector<1x128xf32> to vector<8x128xf32>
    %28 = arith.addf %25, %27 : vector<8x128xf32>
    %c0_15 = arith.constant 0 : index
    %c0_16 = arith.constant 0 : index
    %29 = vector.load %arg7[%c0_15, %c0_16] : memref<8x128xf32, #tpu.memory_space<vmem>>, vector<8x128xf32>
    tpu.vector_store %arg7[%c0_15, %c0_16], %28 {strides = array<i32>} : memref<8x128xf32, #tpu.memory_space<vmem>>, vector<8x128xf32>,
    return
  }
  func.func @transform_0(%arg0: i32) -> (i32, i32) {
    %c0_i32 = arith.constant 0 : i32
    %c0_i32_0 = arith.constant 0 : i32
    %c0_i32_1 = arith.constant 0 : i32
    return %c0_i32, %c0_i32_0 : i32, i32
  }
  func.func @transform_1(%arg0: i32) -> (i32, i32) {
    %c0_i32 = arith.constant 0 : i32
    %c0_i32_0 = arith.constant 0 : i32
    %c0_i32_1 = arith.constant 0 : i32
    return %c0_i32, %c0_i32_0 : i32, i32
  }
  func.func @transform_2(%arg0: i32) -> (i32, i32) {
    %c0_i32 = arith.constant 0 : i32
    %c0_i32_0 = arith.constant 0 : i32
    %c0_i32_1 = arith.constant 0 : i32
    return %c0_i32, %c0_i32_0 : i32, i32
  }
  func.func @transform_3(%arg0: i32) -> (i32, i32) {
    %c0_i32 = arith.constant 0 : i32
    %c0_i32_0 = arith.constant 0 : i32
    %c0_i32_1 = arith.constant 0 : i32
    return %c0_i32, %c0_i32_0 : i32, i32
  }
  func.func @transform_4(%arg0: i32) -> (i32, i32) {
    %c0_i32 = arith.constant 0 : i32
    %c0_i32_0 = arith.constant 0 : i32
    return %c0_i32, %arg0 : i32, i32
  }
  func.func @transform_5(%arg0: i32) -> (i32, i32) {
    %c0_i32 = arith.constant 0 : i32
    %c0_i32_0 = arith.constant 0 : i32
    return %c0_i32, %arg0 : i32, i32
  }
  func.func @transform_6(%arg0: i32) -> (i32, i32) {
    %c0_i32 = arith.constant 0 : i32
    %c0_i32_0 = arith.constant 0 : i32
    return %c0_i32, %arg0 : i32, i32
  }
}

</mosaic_0001>

<bundles_post_ra>
// kernel: tpu_custom_call.1
= control target key start
LH: loop header
LB: loop body
LE: loop exit
PB: predicated region body
PF: predicated region fallthrough
CT: control target
= control target key end

     0   :  { %11 = vsyncpa [#allocation3], 0  ;;  %s1022_s0 = inlined_call_operand.vmem [shape: f32[8,1], index: 0, kind: input, shape index: {}]   ;;  %s1023_s1 = inlined_call_operand.vmem [shape: f32[1,128], index: 1, kind: input, shape index: {}]   ;;  %s1024_s2 = inlined_call_operand.hbm [shape: bf16[256,128], index: 2, kind: input, shape index: {}]   ;;  %s1025_s3 = inlined_call_operand.vmem [shape: f32[1,128], index: 3, kind: input, shape index: {}]   ;;  %s1026_s4 = inlined_call_operand.hbm [shape: bf16[128,128], index: 4, kind: input, shape index: {}]   ;;  %s1027_s5 = inlined_call_operand.vmem [shape: f32[1,128], index: 5, kind: input, shape index: {}]   ;;  %s1028_s6 = inlined_call_operand.hbm [shape: f32[8,128], index: 6, kind: output, shape index: {}]  }
   0x1   :  { %12 = vsyncpa [#allocation6], 0 }
   0x2   :  { %13 = vsyncpa [#allocation4], 0  ;;  %s874_s21 = smov [#allocation2]   ;;  %s802_s25 = scalar_lea.hbm %s1024_s2, 2048 }
   0x3   :  { %s23_s22 = sshll.u32 %s874_s21, 4  ;;  %p803_p0 = scmp.ne.s32.totalorder %s1024_s2, %s802_s25  ;;  %s24_s22 = int_to_ptr.vmem [resolvable:$true] %s23_s22 }
   0x4   :  { %p806_p1 = scmp.lt.u32.totalorder %s802_s25, %s1024_s2 }
   0x6   :  { %p808_p2 = pnand %p806_p1, %p803_p0 }
   0x8   :  { %811 = shalt.err (!%p808_p2)
}
   0x9   :  { %s812_s30 = scalar_lea.vmem %s24_s22, 2048  ;;  %p817_p4 = scmp.lt.s32.totalorder %s24_s22, %s24_s22 }
   0xa   :  { %p813_p3 = scmp.ne.s32.totalorder %s24_s22, %s812_s30  ;;  %p818_p5 = scmp.lt.s32.totalorder %s812_s30, %s812_s30 }
   0xc   :  { %p819_p6 = por %p818_p5, %p817_p4 }
   0xe   :  { %p820_p7 = pnand %p819_p6, %p813_p3 }
  0x10   :  { %823 = shalt.err (!%p820_p7)
}
  0x11   :  { %s875_s7 = smov 64   ;;  %s876_s8 = smov 4  }
  0x12   :  { %29 = dma.hbm_to_vmem [thread:$0]  %s1024_s2, 2048, %s24_s22, [#allocation3], %s875_s7, %s875_s7, %s876_s8  }
  0x13   :  { %s877_s11 = smov [#allocation5]   ;;  %s824_s15 = scalar_lea.hbm %s1026_s4, 1024 }
  0x14   :  { %s37_s12 = sshll.u32 %s877_s11, 4  ;;  %p825_p8 = scmp.ne.s32.totalorder %s1026_s4, %s824_s15  ;;  %s38_s12 = int_to_ptr.vmem [resolvable:$true] %s37_s12 }
  0x15   :  { %p828_p9 = scmp.lt.u32.totalorder %s824_s15, %s1026_s4 }
  0x17   :  { %p830_p10 = pnand %p828_p9, %p825_p8 }
  0x19   :  { %833 = shalt.err (!%p830_p10)
}
  0x1a   :  { %s834_s20 = scalar_lea.vmem %s38_s12, 1024  ;;  %p839_p12 = scmp.lt.s32.totalorder %s38_s12, %s38_s12 }
  0x1b   :  { %p835_p11 = scmp.ne.s32.totalorder %s38_s12, %s834_s20  ;;  %p840_p13 = scmp.lt.s32.totalorder %s834_s20, %s834_s20 }
  0x1d   :  { %p841_p0 = por %p840_p13, %p839_p12 }
  0x1f   :  { %p842_p1 = pnand %p841_p0, %p835_p11 }
  0x21   :  { %845 = shalt.err (!%p842_p1)
}
  0x22   :  { %43 = dma.hbm_to_vmem [thread:$0]  %s1026_s4, 1024, %s38_s12, [#allocation6], %s875_s7, %s875_s7, %s876_s8  }
  0x23   :  { %868 = dma.done.wait [#allocation3], 2048  }
  0x24   :  { %869 = vsyncadd [#allocation3], 4294965248 }
  0x25   :  { %870 = dma.done.wait [#allocation6], 1024  }
  0x26   :  { %871 = vsyncadd [#allocation6], 4294966272  ;;  %v878_v0 = vmov 0   ;;  %v53_v1 = vld [vmem:[%s1022_s0] sm:$0xff]  ;;  %v879_v4 = vmov 0.0   ;;  %v772_v5 = vld [vmem:[#allocation2 + $0x48] sm:$0xff]  }
  0x27   :  { %769 = vset.pattern.permute.xlu0 %v878_v0  ;;  %v770_v2 = vld [vmem:[#allocation2 + $0x40] sm:$0xff]   ;;  %691 = vmatprep.subr.bf16.mxu0 %v879_v4  ;;  %v773_v6 = vld [vmem:[#allocation2 + $0x8] sm:$0xff]   ;;  %v774_v7 = vld [vmem:[#allocation2 + $0x50] sm:$0xff]   ;;  %vm880_vm0 = vmmov 0   ;;  %v881_v32 = vmov 683565275  }
  0x28   :  { %57 = vperm.xlu0 %769, %v53_v1   ;;  %v771_v3 = vld [vmem:[#allocation2] sm:$0xff]   ;;  %711 = vmatprep.subr.bf16.mxu1 %v879_v4  ;;  %v775_v8 = vld [vmem:[#allocation2 + $0x10] sm:$0xff]   ;;  %v776_v9 = vld [vmem:[#allocation2 + $0x58] sm:$0xff]   ;;  %v882_v34 = vmov 2475754826  }
  0x29   :  { %692 = vmatpush3.bf16.msra.mxu0 %v770_v2  ;;  %712 = vmatpush3.bf16.msra.mxu1 %v771_v3  ;;  %v777_v10 = vld [vmem:[#allocation2 + $0x18] sm:$0xff]   ;;  %v778_v11 = vld [vmem:[#allocation2 + $0x60] sm:$0xff]   ;;  %v780_v13 = vld [vmem:[#allocation2 + $0x68] sm:$0xff]   ;;  %v883_v37 = vmov 2131351028  }
  0x2a   :  { %693 = vmatprep.subr.bf16.mxu0 %v879_v4  ;;  %713 = vmatprep.subr.bf16.mxu1 %v879_v4  ;;  %v779_v12 = vld [vmem:[#allocation2 + $0x20] sm:$0xff]   ;;  %v781_v14 = vld [vmem:[#allocation2 + $0x28] sm:$0xff]   ;;  %v782_v15 = vld [vmem:[#allocation2 + $0x70] sm:$0xff]   ;;  %v884_v40 = vmov 2102212464  }
  0x2b   :  { %707 = vmatprep.mubr.msk.bf16.mxu0 %vm880_vm0, %v879_v4  ;;  %727 = vmatprep.mubr.msk.bf16.mxu1 %vm880_vm0, %v879_v4  ;;  %v783_v16 = vld [vmem:[#allocation2 + $0x30] sm:$0xff]   ;;  %v784_v17 = vld [vmem:[#allocation2 + $0x78] sm:$0xff]   ;;  %v628_v19 = vld [vmem:[%s1023_s1] ss:$0 sm:$0xff]  ;;  %v885_v43 = vmov 920167782  }
  0x2c   :  { %v785_v18 = vld [vmem:[#allocation2 + $0x38] sm:$0xff]   ;;  %v886_v46 = vmov 1326507024  }
  0x2d   :  { %694 = vmatpush3.bf16.msra.mxu0 %v772_v5  ;;  %714 = vmatpush3.bf16.msra.mxu1 %v773_v6 }
  0x2e   :  { %695 = vmatprep.subr.bf16.mxu0 %v879_v4  ;;  %715 = vmatprep.subr.bf16.mxu1 %v879_v4 }
  0x31   :  { %696 = vmatpush3.bf16.msra.mxu0 %v774_v7  ;;  %716 = vmatpush3.bf16.msra.mxu1 %v775_v8 }
  0x32   :  { %697 = vmatprep.subr.bf16.mxu0 %v879_v4  ;;  %717 = vmatprep.subr.bf16.mxu1 %v879_v4 }
  0x35   :  { %698 = vmatpush3.bf16.msra.mxu0 %v776_v9  ;;  %718 = vmatpush3.bf16.msra.mxu1 %v777_v10 }
  0x36   :  { %699 = vmatprep.subr.bf16.mxu0 %v879_v4  ;;  %719 = vmatprep.subr.bf16.mxu1 %v879_v4 }
  0x39   :  { %700 = vmatpush3.bf16.msra.mxu0 %v778_v11  ;;  %720 = vmatpush3.bf16.msra.mxu1 %v779_v12 }
  0x3a   :  { %701 = vmatprep.subr.bf16.mxu0 %v879_v4  ;;  %721 = vmatprep.subr.bf16.mxu1 %v879_v4 }
  0x3d   :  { %702 = vmatpush3.bf16.msra.mxu0 %v780_v13  ;;  %722 = vmatpush3.bf16.msra.mxu1 %v781_v14 }
  0x3e   :  { %703 = vmatprep.subr.bf16.mxu0 %v879_v4  ;;  %723 = vmatprep.subr.bf16.mxu1 %v879_v4 }
  0x41   :  { %704 = vmatpush3.bf16.msra.mxu0 %v782_v15  ;;  %724 = vmatpush3.bf16.msra.mxu1 %v783_v16 }
  0x42   :  { %705 = vmatprep.subr.bf16.mxu0 %v879_v4  ;;  %725 = vmatprep.subr.bf16.mxu1 %v879_v4 }
  0x45   :  { %706 = vmatpush3.bf16.msra.mxu0 %v784_v17  ;;  %726 = vmatpush3.bf16.msra.mxu1 %v785_v18 }
  0x46   :  { %731 = vmatprep.subr.bf16.mxu0 %v879_v4 }
  0xa7   :  { %v58_v20 = vpop.permute.xlu0 %57 }
  0xa8   :  { %v974_v21 = vmul.f32 %v628_v19, %v58_v20 }
  0xaa   :  { %v70_v22 = vand.u32 2139095040, %v974_v21  ;;  %v67_v26 = vand.u32 2147483647, %v974_v21  ;;  %vm69_vm8 = vcmp.lt.s32.totalorder %v974_v21, 0 }
  0xac   :  { %v71_v23 = vshrl.u32 %v70_v22, 23  ;;  %v74_v29 = vand.u32 8388607, %v67_v26  ;;  %vm68_vm9 = vcmp.le.f32.partialorder %v67_v26, 0.7853982 }
  0xae   :  { %v629_v24 = vadd.s32 4294967169, %v71_v23  ;;  %v75_v48 = vor.u32 8388608, %v74_v29 }
  0xb0   :  { %v77_v25 = vadd.s32 1, %v629_v24  ;;  %v115_v62 = vshll.u32 %v75_v48, 8 }
  0xb2   :  { %vm78_vm1 = vcmp.gt.s32.totalorder %v77_v25, 0 }
  0xb3   :  { %v79_v27 = vsel %vm78_vm1, %v77_v25, 0  ;;  %vm159_vm1 = vweird.f32 %v974_v21 }
  0xb4   :  { %v81_v28 = vand.u32 31, %v79_v27  ;;  %v80_v31 = vshrl.u32 %v79_v27, 5 }
  0xb6   :  { %v82_v30 = vsub.s32 32, %v81_v28  ;;  %v84_v33 = vshll.u32 %v881_v32, %v81_v28  ;;  %v87_v35 = vshll.u32 %v882_v34, %v81_v28  ;;  %v90_v39 = vshll.u32 %v883_v37, %v81_v28 }
  0xb7   :  { %v93_v42 = vshll.u32 %v884_v40, %v81_v28  ;;  %v96_v45 = vshll.u32 %v885_v43, %v81_v28  ;;  %vm99_vm2 = vcmp.lt.s32.totalorder %v80_v31, 1  ;;  %vm102_vm3 = vcmp.lt.s32.totalorder %v80_v31, 4 }
  0xb8   :  { %v85_v36 = vshrl.u32 %v882_v34, %v82_v30  ;;  %v88_v38 = vshrl.u32 %v883_v37, %v82_v30  ;;  %v91_v41 = vshrl.u32 %v884_v40, %v82_v30  ;;  %v94_v44 = vshrl.u32 %v885_v43, %v82_v30 }
  0xb9   :  { %v97_v47 = vshrl.u32 %v886_v46, %v82_v30  ;;  %v83_v57 = vshrl.u32 %v881_v32, %v82_v30  ;;  %vm101_vm4 = vcmp.lt.s32.totalorder %v80_v31, 3  ;;  %vm100_vm5 = vcmp.lt.s32.totalorder %v80_v31, 2 }
  0xba   :  { %v86_v49 = vor.u32 %v85_v36, %v84_v33  ;;  %v89_v50 = vor.u32 %v88_v38, %v87_v35  ;;  %v92_v51 = vor.u32 %v91_v41, %v90_v39  ;;  %v95_v52 = vor.u32 %v94_v44, %v93_v42 }
  0xbb   :  { %v98_v53 = vor.u32 %v97_v47, %v96_v45 }
  0xbc   :  { %v104_v54 = vsel %vm102_vm3, %v92_v51, 2102212464  ;;  %v107_v55 = vsel %vm99_vm2, %v86_v49, %v89_v50  ;;  %v111_v56 = vsel %vm99_vm2, %v89_v50, %v92_v51  ;;  %v108_v58 = vsel %vm102_vm3, %v95_v52, 920167782 }
  0xbd   :  { %v112_v59 = vsel %vm102_vm3, %v98_v53, 1326507024  ;;  %v109_v60 = vsel %vm101_vm4, %v92_v51, %v108_v58  ;;  %v103_v63 = vsel %vm99_vm2, %v83_v57, %v86_v49  ;;  %v105_v0 = vsel %vm101_vm4, %v89_v50, %v104_v54  ;;  %v786_v58 = vld [vmem:[#allocation5] sm:$0xff]  }
  0xbe   :  { %v113_v61 = vsel %vm101_vm4, %v95_v52, %v112_v59  ;;  %v110_v1 = vsel %vm100_vm5, %v107_v55, %v109_v60  ;;  %v106_v8 = vsel %vm100_vm5, %v103_v63, %v105_v0  ;;  %v787_v59 = vld [vmem:[#allocation5 + $0x8] sm:$0xff]   ;;  %v789_v60 = vld [vmem:[#allocation5 + $0x18] sm:$0xff]   ;;  %v792_v63 = vld [vmem:[#allocation5 + $0x30] sm:$0xff]  }
  0xbf   :  { %v114_v2 = vsel %vm100_vm5, %v111_v56, %v113_v61  ;;  %v983_v6 = vmul.u32.u64.low %v115_v62, %v110_v1  ;;  %v984_v7 = vmul.u32.u64.high %v115_v62, %v110_v1, %v983_v6  ;;  %v122_v10 = vmul.u32 %v115_v62, %v106_v8  ;;  %v790_v61 = vld [vmem:[#allocation5 + $0x20] sm:$0xff]   ;;  %v793_v0 = vld [vmem:[#allocation5 + $0x38] sm:$0xff]  }
  0xc0   :  { %v980_v3 = vmul.u32.u64.low %v115_v62, %v114_v2  ;;  %v981_v5 = vmul.u32.u64.high %v115_v62, %v114_v2, %v980_v3  ;;  %v791_v62 = vld [vmem:[#allocation5 + $0x28] sm:$0xff]  }
  0xc1   :  { %v125_v9 = vadd.s32 1, %v984_v7  ;;  %v653_v3 = vld [vmem:[%s1025_s3] ss:$0 sm:$0xff]  ;;  %s887_s3 = smov [#allocation7]  }
  0xc2   :  { %vm124_vm6 = vc.u32 %v981_v5, %v983_v6  ;;  %v123_v23 = vadd.s32 %v983_v6, %v981_v5  ;;  %s618_s27 = sshll.u32 %s887_s3, 4  ;;  %s619_s27 = int_to_ptr.vmem [resolvable:$true] %s618_s27 }
  0xc3   :  { %v126_v11 = vsel %vm124_vm6, %v125_v9, %v984_v7  ;;  %s846_s28 = scalar_lea.vmem %s619_s27, 128  ;;  %p851_p3 = scmp.lt.s32.totalorder %s619_s27, %s619_s27 }
  0xc4   :  { %v127_v12 = vadd.s32 %v126_v11, %v122_v10  ;;  %p847_p2 = scmp.ne.s32.totalorder %s619_s27, %s846_s28  ;;  %p852_p4 = scmp.lt.s32.totalorder %s846_s28, %s846_s28 }
  0xc6   :  { %v128_v13 = vadd.s32 536870912, %v127_v12  ;;  %p853_p5 = por %p852_p4, %p851_p3 }
  0xc8   :  { %v129_v14 = vshrl.u32 %v128_v13, 30  ;;  %p854_p6 = pnand %p853_p5, %p847_p2 }
  0xca   :  { %v130_v15 = vshll.u32 %v129_v14, 30  ;;  %v153_v36 = vsub.s32 4, %v129_v14 }
  0xcc   :  { %v131_v16 = vsub.s32 %v127_v12, %v130_v15  ;;  %v154_v39 = vsel %vm69_vm8, %v153_v36, %v129_v14 }
  0xcd   :  { %v156_v41 = vsel %vm68_vm9, 0, %v154_v39 }
  0xce   :  { %v133_v17 = vsub.s32 0, %v131_v16  ;;  %v264_v42 = vadd.s32 3, %v156_v41  ;;  %v160_v44 = vand.u32 3, %v156_v41 }
  0xd0   :  { %v630_v18 = vmin.u32 %v133_v17, %v131_v16  ;;  %v265_v43 = vand.u32 3, %v264_v42  ;;  %vm165_vm11 = vcmp.eq.s32.totalorder %v160_v44, 2  ;;  %vm162_vm13 = vcmp.eq.s32.totalorder %v160_v44, 0 }
  0xd1   :  { %vm161_vm15 = vcmp.lt.s32.totalorder %v160_v44, 2 }
  0xd2   :  { %v135_v19 = vclz %v630_v18  ;;  %vm270_vm10 = vcmp.eq.s32.totalorder %v265_v43, 2  ;;  %vm267_vm12 = vcmp.eq.s32.totalorder %v265_v43, 0  ;;  %vm266_vm14 = vcmp.lt.s32.totalorder %v265_v43, 2  ;;  %v655_v18 = vld [vmem:[%s1027_s5] ss:$0 sm:$0xff] }
  0xd4   :  { %v631_v20 = vadd.s32 4294967294, %v135_v19 }
  0xd6   :  { %vm632_vm7 = vcmp.lt.s32.totalorder %v631_v20, 0 }
  0xd7   :  { %v138_v22 = vsel %vm632_vm7, 0, %v631_v20 }
  0xd8   :  { %v139_v24 = vsub.s32 32, %v138_v22  ;;  %v143_v25 = vsub.s32 4294967266, %v138_v22  ;;  %v140_v27 = vshll.u32 %v131_v16, %v138_v22 }
  0xda   :  { %v141_v28 = vshrl.u32 %v123_v23, %v139_v24  ;;  %v144_v29 = vadd.s32 127, %v143_v25 }
  0xdc   :  { %v142_v30 = vor.u32 %v141_v28, %v140_v27  ;;  %v145_v31 = vshll.u32 %v144_v29, 23 }
  0xde   :  { %v146_v32 = vor.u32 4788187, %v145_v31  ;;  %v149_v34 = vcvt.s32.f32 %v142_v30 }
  0xe0   :  { %v147_v33 = vand.u32 2147483647, %v146_v32 }
  0xe2   :  { %v150_v35 = vmul.f32 %v149_v34, %v147_v33 }
  0xe4   :  { %v151_v37 = vxor.u32 2147483648, %v150_v35 }
  0xe6   :  { %v152_v38 = vsel %vm69_vm8, %v151_v37, %v150_v35 }
  0xe7   :  { %v155_v40 = vsel %vm68_vm9, %v974_v21, %v152_v38  ;;  %v788_v21 = vld [vmem:[#allocation5 + $0x10] sm:$0xff]  }
  0xe8   :  { %794 = vcosq.f32 %v155_v40 }
  0xe9   :  { %796 = vsinq.f32 %v155_v40 }
  0xf2   :  { %v795_v45 = vpop.eup %794 }
  0xf3   :  { %v797_v46 = vpop.eup %796  ;;  %v166_v47 = vxor.u32 2147483648, %v795_v45 }
  0xf4   :  { %v163_v48 = vxor.u32 2147483648, %v797_v46 }
  0xf5   :  { %v272_v49 = vsel %vm270_vm10, %v166_v47, %v797_v46  ;;  %v167_v26 = vsel %vm165_vm11, %v166_v47, %v797_v46 }
  0xf6   :  { %v269_v50 = vsel %vm267_vm12, %v795_v45, %v163_v48  ;;  %v164_v51 = vsel %vm162_vm13, %v795_v45, %v163_v48 }
  0xf7   :  { %v273_v52 = vsel %vm266_vm14, %v269_v50, %v272_v49  ;;  %v168_v53 = vsel %vm161_vm15, %v164_v51, %v167_v26 }
  0xf8   :  { %v274_v54 = vsel %vm159_vm1, nan, %v273_v52  ;;  %v169_v55 = vsel %vm159_vm1, nan, %v168_v53 }
  0xf9   :  { %v275_v56 = vpack.c.bf16 %v274_v54, %v274_v54  ;;  %v170_v57 = vpack.c.bf16 %v169_v55, %v169_v55 }
  0xfb   :  { %708 = vmatmul.mubr.bf16.vlgmr.msra.gmra.mrb[0].mxu0 %v275_v56  ;;  %728 = vmatmul.mubr.bf16.vlgmr.msra.gmra.mrb[0].mxu1 %v170_v57 }
  0xfc   :  { %747 = vmatprep.mubr.msk.bf16.mxu0 %vm880_vm0, %v879_v4  ;;  %732 = vmatpush3.bf16.msra.mxu0 %v786_v58 }
  0xfd   :  { %733 = vmatprep.subr.bf16.mxu0 %v879_v4 }
 0x100   :  { %734 = vmatpush3.bf16.msra.mxu0 %v787_v59 }
 0x101   :  { %735 = vmatprep.subr.bf16.mxu0 %v879_v4 }
 0x104   :  { %736 = vmatpush3.bf16.msra.mxu0 %v788_v21 }
 0x105   :  { %737 = vmatprep.subr.bf16.mxu0 %v879_v4 }
 0x108   :  { %738 = vmatpush3.bf16.msra.mxu0 %v789_v60 }
 0x109   :  { %739 = vmatprep.subr.bf16.mxu0 %v879_v4 }
 0x10c   :  { %740 = vmatpush3.bf16.msra.mxu0 %v790_v61 }
 0x10d   :  { %741 = vmatprep.subr.bf16.mxu0 %v879_v4 }
 0x110   :  { %742 = vmatpush3.bf16.msra.mxu0 %v791_v62 }
 0x111   :  { %743 = vmatprep.subr.bf16.mxu0 %v879_v4 }
 0x114   :  { %744 = vmatpush3.bf16.msra.mxu0 %v792_v63 }
 0x115   :  { %745 = vmatprep.subr.bf16.mxu0 %v879_v4 }
 0x118   :  { %746 = vmatpush3.bf16.msra.mxu0 %v793_v0 }
 0x1ce   :  { %v390_v1 = vpop.f32.mrb[0].mxu0  ;;  %v478_v2 = vpop.f32.mrb[0].mxu1 }
 0x1cf   :  { %v479_v5 = vadd.f32 %v478_v2, %v390_v1  ;;  %v709_v6 = vpop.f32.mrb[1].mxu0  ;;  %v729_v7 = vpop.f32.mrb[1].mxu1 }
 0x1d0   :  { %v393_v8 = vpop.f32.mrb[2].mxu0  ;;  %v481_v9 = vpop.f32.mrb[2].mxu1 }
 0x1d1   :  { %v491_v10 = vadd.f32 %v653_v3, %v479_v5  ;;  %v710_v11 = vpop.f32.mrb[3].mxu0  ;;  %v730_v12 = vpop.f32.mrb[3].mxu1 }
 0x1d3   :  { %v654_v13 = vmul.f32 -1.442695, %v491_v10 }
 0x1d5   :  { %798 = vpow2.f32 %v654_v13 }
 0x1df   :  { %v799_v14 = vpop.eup %798 }
 0x1e0   :  { %v495_v4 = vadd.f32 1.0, %v799_v14 }
 0x1e2   :  { %800 = vrcp.f32 %v495_v4 }
 0x1ec   :  { %v801_v15 = vpop.eup %800 }
 0x1ed   :  { %v498_v16 = vmul.f32 %v801_v15, %v491_v10 }
 0x1ef   :  { %v499_v17 = vpack.c.bf16 %v498_v16, %v498_v16 }
 0x1f1   :  { %748 = vmatmul.mubr.bf16.vlgmr.msra.gmra.mrb[4].mxu0 %v499_v17 }
 0x2c4   :  { %v605_v19 = vpop.f32.mrb[4].mxu0 }
 0x2c5   :  { %v606_v20 = vadd.f32 %v655_v18, %v605_v19  ;;  %v749_v22 = vpop.f32.mrb[5].mxu0 }
 0x2c6   :  { %v608_v23 = vpop.f32.mrb[6].mxu0 }
 0x2c7   :  { %611 = vst [vmem:[#allocation7] sm:$0xff] %v606_v20  ;;  %v750_v24 = vpop.f32.mrb[7].mxu0 }
 0x2c8   :  { %857 = shalt.err (!%p854_p6)
}
 0x2c9   :  { %s858_s5 = scalar_lea.hbm %s1028_s6, 128 }
 0x2ca   :  { %p859_p7 = scmp.ne.s32.totalorder %s1028_s6, %s858_s5  ;;  %p862_p8 = scmp.lt.u32.totalorder %s858_s5, %s1028_s6 }
 0x2cc   :  { %p864_p9 = pnand %p862_p8, %p859_p7 }
 0x2ce   :  { %867 = shalt.err (!%p864_p9)
}
 0x2cf   :  { %621 = dma.vmem_to_hbm [thread:$0]  %s619_s27, 128, %s1028_s6, [#allocation4]  }
 0x2d0   :  { %872 = dma.done.wait [#allocation4], 128  }
 0x2d1   :  { %873 = vsyncadd [#allocation4], 4294967168 }
 0x2d2   :  { %625 = vsyncpa [#allocation3], 1 }
 0x2d3   :  { %626 = vsyncpa [#allocation6], 1 }
 0x2d4   :  { %627 = vsyncpa [#allocation4], 1 }

</bundles_post_ra>
